<compile_context>
chip_gen: v5e
topology: v5e:2x2
jax: 0.10.0
libtpu: 0.0.40
codegen_flags: <defaults>
</compile_context>

<pallas_src>
import functools
from typing import NamedTuple, Tuple

import numpy as np
import jax
import jax.numpy as jnp
from jax.experimental import pallas as pl
from jax.experimental.pallas import tpu as pltpu

_LANE = 128      # vreg lane width: last dim should be a multiple of this
_SUBLANE = 8     # vreg sublane count (32-bit); 16 for bf16, 32 for 8-bit


def _round_up(x, m):
    return (x + m - 1) // m * m


def _cdiv(a, b):
    return -(-a // b)


@functools.lru_cache(maxsize=1)
def _tpu_hw_info():
    """Best-effort (vmem_capacity_bytes, tensorcores_per_chip)."""
    kind = ""
    try:
        kind = jax.devices()[0].device_kind.lower()
    except Exception:
        pass
    vmem_bytes = None
    try:
        vmem_bytes = int(pltpu.get_tpu_info().vmem_capacity_bytes)
    except Exception:
        vmem_bytes = None
    if vmem_bytes is None or vmem_bytes <= 0:
        vmem_bytes = (64 << 20) if "v7" in kind else (128 << 20)
    num_tc = 2 if "v7" in kind else 1   # v5e/v6e: one TensorCore per chip
    return vmem_bytes, num_tc


@functools.lru_cache(maxsize=1)
def _single_buffer_supported():
    """Probe once whether pipeline_mode=pl.Buffered(1) lowers/runs on this install."""
    try:
        def k(a_ref, o_ref):
            o_ref[...] = a_ref[...] * 2.0
        f = pl.pallas_call(
            k,
            out_shape=jax.ShapeDtypeStruct((8, 128), jnp.float32),
            grid=(1,),
            in_specs=[pl.BlockSpec((8, 128), lambda i: (0, 0),
                                   pipeline_mode=pl.Buffered(1))],
            out_specs=pl.BlockSpec((8, 128), lambda i: (0, 0)),
        )
        jax.block_until_ready(f(jnp.ones((8, 128), jnp.float32)))
        return True
    except Exception:
        return False


class MLPParams(NamedTuple):
    weights: Tuple[jax.Array, ...]    # padded [K_pad, N_pad] in compute dtype
    biases: Tuple[jax.Array, ...]     # padded [1, N_pad] in f32
    feat: Tuple[int, ...]             # original feature dims [in, h, ..., out]
    feat_pad: Tuple[int, ...]         # 128-padded feature dims
    compute_dtype: np.dtype


def prepare_mlp_params(weights, biases, compute_dtype=jnp.bfloat16):
    """One-time parameter prep: pad feature dims to 128-lane multiples and cast.

    Zero padding is exact for Linear(+ReLU): padded input/weight/bias entries are 0, so
    padded output columns stay 0 and are sliced off after the kernel.
    """
    c_dtype = np.dtype(compute_dtype)
    feat = [weights[0].shape[0]] + [w.shape[1] for w in weights]
    feat_pad = [_round_up(d, _LANE) for d in feat]
    w_out, b_out = [], []
    for li, (w, b) in enumerate(zip(weights, biases)):
        k_pad, n_pad = feat_pad[li], feat_pad[li + 1]
        w_p = (jnp.zeros((k_pad, n_pad), c_dtype)
               .at[:w.shape[0], :w.shape[1]].set(jnp.asarray(w, c_dtype)))
        b_p = (jnp.zeros((1, n_pad), jnp.float32)
               .at[0, :b.shape[-1]].set(jnp.asarray(b, jnp.float32).reshape(-1)))
        w_out.append(w_p)
        b_out.append(b_p)
    return MLPParams(tuple(w_out), tuple(b_out), tuple(feat), tuple(feat_pad), c_dtype)


def _mlp_kernel(num_layers, compute_dtype, x_ref, *refs):
    """refs = (w1, b1, ..., wL, bL, out_ref); feature dims pre-padded to 128."""
    out_ref = refs[-1]
    params = refs[:-1]
    h = x_ref[...].astype(compute_dtype)
    for i in range(num_layers):
        w = params[2 * i][...]        # [K_pad, N_pad] compute dtype
        b = params[2 * i + 1][...]    # [1, N_pad] f32
        # MXU matmul in compute dtype (bf16 on v5e/v6e/v7x), f32 accumulation.
        acc = jnp.dot(h, w, preferred_element_type=jnp.float32) + b
        if i < num_layers - 1:
            # bias + ReLU in f32 on the VPU, then cast ONCE to the compute dtype so the
            # live inter-layer intermediate is half-width (lower vreg/VMEM pressure).
            h = jnp.maximum(acc, 0.0).astype(compute_dtype)
        else:
            h = acc
    out_ref[...] = h.astype(out_ref.dtype)


def mlp_pallas(x, weights=None, biases=None, *, params=None, row_tile=None,
               compute_dtype=jnp.bfloat16, out_dtype=None,
               single_buffer_params=None):
    """Fused MLP forward.  x: [..., input_dim] -> [..., output_dim].

    Pass `params=prepare_mlp_params(...)` (done once) to avoid re-padding/casting the
    weights on every call; otherwise raw `weights`/`biases` are prepped on the fly.
    """
    if params is None:
        params = prepare_mlp_params(weights, biases, compute_dtype)
    num_layers = len(params.weights)
    feat, feat_pad = params.feat, params.feat_pad
    in_dim, out_dim = feat[0], feat[-1]
    in_pad, out_pad = feat_pad[0], feat_pad[-1]
    c_dtype = np.dtype(params.compute_dtype)
    out_dtype = np.dtype(x.dtype if out_dtype is None else out_dtype)
    x_itemsize = np.dtype(x.dtype).itemsize

    if single_buffer_params is None:
        single_buffer_params = _single_buffer_supported()
    param_buf = 1 if single_buffer_params else 2

    orig_shape = x.shape
    x2d = x.reshape(-1, in_dim)
    m = x2d.shape[0]

    # ---- parameter VMEM footprint (weights + biases, constant index maps) ------------
    param_bytes = 0
    for w_p, b_p in zip(params.weights, params.biases):
        param_bytes += (w_p.size * np.dtype(w_p.dtype).itemsize
                        + b_p.size * np.dtype(b_p.dtype).itemsize)

    vmem_cap, num_tc = _tpu_hw_info()
    vmem_cap_usable = int(vmem_cap * 0.85)     # ~15% headroom (v7x -> ~54 MiB)

    # ---- row-tile granularity: respect packed-sublane layouts for narrow dtypes ------
    min_itemsize = max(1, min(x_itemsize, out_dtype.itemsize, c_dtype.itemsize))
    gran = max(_SUBLANE, 32 // min_itemsize)

    max_k = max(feat_pad[:-1])
    max_n = max(feat_pad[1:])

    def vmem_budget(rt):
        x_b = 2 * rt * in_pad * x_itemsize                  # double-buffered input tile
        o_b = 2 * rt * out_pad * out_dtype.itemsize         # double-buffered output tile
        # live intermediates: prev-layer f32 acc + its compute-dtype copy + new f32 acc
        h_b = rt * (max_k * 4 + max_k * c_dtype.itemsize + max_n * 4)
        return x_b + o_b + h_b + param_buf * param_bytes + (2 << 20)

    # ---- row tile: default 512, scaled down against available VMEM (256 soft floor) --
    target = 512 if row_tile is None else int(row_tile)
    rt = min(_round_up(target, gran), _round_up(max(m, 1), gran))
    while rt > 256 and vmem_budget(rt) > vmem_cap_usable:
        rt = _round_up(max(256, rt // 2), gran)
    while rt > gran and vmem_budget(rt) > vmem_cap_usable:
        rt = _round_up(max(gran, rt // 2), gran)
    # TODO(synk): if vmem_budget(rt) still exceeds the cap here (real DETR hidden widths
    # on v7x), N-axis weight tiling is required rather than hoping the compiler copes.

    # ---- v7x megacore: split into an even number of >=2 grid steps when there is work.
    # v5e/v6e have one TensorCore, so splitting there only adds per-step overhead.
    if num_tc >= 2 and _cdiv(m, rt) < 2 and m > 256:
        rt = _round_up(_cdiv(m, 2), 256)

    m_pad = _round_up(m, rt)
    grid = (m_pad // rt,)

    # ---- input: skip the extra HBM pad pass when no padding is actually needed -------
    if (in_pad != in_dim) or (m_pad != m):
        x_op = jnp.zeros((m_pad, in_pad), x.dtype).at[:m, :in_dim].set(x2d)
    else:
        x_op = x2d

    sb_kwargs = dict(pipeline_mode=pl.Buffered(1)) if single_buffer_params else {}
    operands = [x_op]
    in_specs = [pl.BlockSpec((rt, in_pad), lambda i: (i, 0))]
    flops = 0
    for li in range(num_layers):
        k_pad, n_pad = feat_pad[li], feat_pad[li + 1]
        operands += [params.weights[li], params.biases[li]]
        # Whole weight/bias VMEM-resident; constant index map -> DMA'd once, reused by
        # every row tile; single-buffered when supported (no pointless 2x weight VMEM).
        in_specs.append(pl.BlockSpec((k_pad, n_pad), lambda i: (0, 0), **sb_kwargs))
        in_specs.append(pl.BlockSpec((1, n_pad), lambda i: (0, 0), **sb_kwargs))
        flops += 2 * m_pad * k_pad * n_pad

    out_specs = pl.BlockSpec((rt, out_pad), lambda i: (i, 0))

    vmem_limit = int(min(max(vmem_budget(rt), 8 << 20), vmem_cap_usable))
    bytes_accessed = (m_pad * in_pad * x_itemsize + param_bytes
                      + m_pad * out_pad * out_dtype.itemsize)
    cost = pl.CostEstimate(flops=flops, transcendentals=0,
                           bytes_accessed=bytes_accessed)

    kernel = functools.partial(_mlp_kernel, num_layers, c_dtype)
    y_pad = pl.pallas_call(
        kernel,
        out_shape=jax.ShapeDtypeStruct((m_pad, out_pad), out_dtype),
        grid_spec=pltpu.PrefetchScalarGridSpec(
            num_scalar_prefetch=0,
            grid=grid,
            in_specs=in_specs,
            out_specs=out_specs,
        ),
        compiler_params=pltpu.CompilerParams(
            dimension_semantics=("parallel",),
            vmem_limit_bytes=vmem_limit),
        cost_estimate=cost,
    )(*operands)

    if (out_pad != out_dim) or (m_pad != m):
        y2d = y_pad[:m, :out_dim]
    else:
        y2d = y_pad
    return y2d.reshape(*orig_shape[:-1], out_dim)


def mlp_reference(x, weights, biases):
    h = x.astype(jnp.float32)
    n = len(weights)
    for i, (w, b) in enumerate(zip(weights, biases)):
        h = h @ w + b
        if i < n - 1:
            h = jnp.maximum(h, 0.0)
    return h


def init_mlp_params(key, input_dim, hidden_dim, output_dim, num_layers):
    """Deterministic synthetic params matching nn.Linear shapes (stored transposed)."""
    h = [hidden_dim] * (num_layers - 1)
    dims_in = [input_dim] + h
    dims_out = h + [output_dim]
    weights, biases = [], []
    for n_in, n_out in zip(dims_in, dims_out):
        key, kw, kb = jax.random.split(key, 3)
        bound = 1.0 / (n_in ** 0.5)
        weights.append(jax.random.uniform(kw, (n_in, n_out), jnp.float32,
                                          minval=-bound, maxval=bound))
        biases.append(jax.random.uniform(kb, (n_out,), jnp.float32,
                                         minval=-bound, maxval=bound))
    return weights, biases


if __name__ == "__main__":
    # MLP(input_dim=16, hidden_dim=32, output_dim=4, num_layers=3); x: [batch, seq, D]
    input_dim, hidden_dim, output_dim, num_layers = 16, 32, 4, 3
    batch, seq = 2, 8

    key = jax.random.PRNGKey(0)
    key, kx = jax.random.split(key)
    x = jax.random.normal(kx, (batch, seq, input_dim), jnp.float32)
    weights, biases = init_mlp_params(key, input_dim, hidden_dim, output_dim,
                                      num_layers)
    y_ref = mlp_reference(x, weights, biases)

    # One-time parameter prep (hoisted out of the forward call).
    params_f32 = prepare_mlp_params(weights, biases, compute_dtype=jnp.float32)
    params_bf16 = prepare_mlp_params(weights, biases)  # bf16 default fast path

    # f32 compute path (tight tolerance).
    y = mlp_pallas(x, params=params_f32)
    jax.block_until_ready(y)
    assert y.shape == (batch, seq, output_dim)
    assert jnp.allclose(y, y_ref, atol=1e-5, rtol=1e-5)

    # bf16-MXU / f32-accumulate path (the default fast path), looser tolerance.
    y_bf16 = mlp_pallas(x, params=params_bf16, out_dtype=jnp.float32)
    jax.block_until_ready(y_bf16)
    assert jnp.allclose(y_bf16, y_ref, atol=5e-2, rtol=5e-2)

    # Row count not divisible by the tile: exercises the row pad + slice path, grid > 1,
    # and reuses the already-prepared params.
    x2 = jax.random.normal(jax.random.PRNGKey(1), (3, 50, input_dim), jnp.float32)
    y2 = mlp_pallas(x2, params=params_f32, row_tile=128)
    jax.block_until_ready(y2)
    assert jnp.allclose(y2, mlp_reference(x2, weights, biases),
                        atol=1e-5, rtol=1e-5)

    # 128-multiple feature dims + tile-divisible rows: exercises the zero-copy input
    # path (no wrapper-side x pad, no output slice) and the auto row-tile selection.
    in3, hid3, out3 = 256, 256, 128
    key3, kx3 = jax.random.split(jax.random.PRNGKey(2))
    w3, b3 = init_mlp_params(key3, in3, hid3, out3, 3)
    x3 = jax.random.normal(kx3, (4, 128, in3), jnp.float32)
    y3 = mlp_pallas(x3, params=prepare_mlp_params(w3, b3))
    jax.block_until_ready(y3)
    assert jnp.allclose(y3, mlp_reference(x3, w3, b3), atol=5e-2, rtol=5e-2)

    print("KERNEL_OK")
</pallas_src>

<mosaic_0001>
module attributes {stable_mosaic.version = 11 : i64} {
  func.func @k(%arg0: i32, %arg1: memref<8x128xf32, #tpu.memory_space<vmem>>, %arg2: memref<8x128xf32, #tpu.memory_space<vmem>>) attributes {dimension_semantics = [#tpu.dimension_semantics<arbitrary>], iteration_bounds = array<i64: 1>, scalar_prefetch = 0 : i64, scratch_operands = 0 : i64, tpu.core_type = #tpu.core_type<tc>, window_params = [{pipeline_mode = #tpu.pipeline_mode<synchronous>, transform_indices = @transform_0, window_bounds = array<i64: 8, 128>}, {pipeline_mode = #tpu.pipeline_mode<synchronous>, transform_indices = @transform_1, window_bounds = array<i64: 8, 128>}]} {
    %c0 = arith.constant 0 : index
    %c0_0 = arith.constant 0 : index
    %0 = vector.load %arg1[%c0, %c0_0] : memref<8x128xf32, #tpu.memory_space<vmem>>, vector<8x128xf32>
    %cst = arith.constant 2.000000e+00 : f32
    %1 = vector.broadcast %cst : f32 to vector<8x128xf32>
    %2 = arith.mulf %0, %1 : vector<8x128xf32>
    %c0_1 = arith.constant 0 : index
    %c0_2 = arith.constant 0 : index
    %3 = vector.load %arg2[%c0_1, %c0_2] : memref<8x128xf32, #tpu.memory_space<vmem>>, vector<8x128xf32>
    tpu.vector_store %arg2[%c0_1, %c0_2], %2 {strides = array<i32>} : memref<8x128xf32, #tpu.memory_space<vmem>>, vector<8x128xf32>,
    return
  }
  func.func @transform_0(%arg0: i32) -> (i32, i32) {
    %c0_i32 = arith.constant 0 : i32
    %c0_i32_0 = arith.constant 0 : i32
    %c0_i32_1 = arith.constant 0 : i32
    return %c0_i32, %c0_i32_0 : i32, i32
  }
  func.func @transform_1(%arg0: i32) -> (i32, i32) {
    %c0_i32 = arith.constant 0 : i32
    %c0_i32_0 = arith.constant 0 : i32
    %c0_i32_1 = arith.constant 0 : i32
    return %c0_i32, %c0_i32_0 : i32, i32
  }
}

module attributes {stable_mosaic.version = 11 : i64} {
  func.func @_mlp_kernel(%arg0: i32, %arg1: memref<16x128xf32, #tpu.memory_space<vmem>>, %arg2: memref<128x128xf32, #tpu.memory_space<vmem>>, %arg3: memref<1x128xf32, #tpu.memory_space<vmem>>, %arg4: memref<128x128xf32, #tpu.memory_space<vmem>>, %arg5: memref<1x128xf32, #tpu.memory_space<vmem>>, %arg6: memref<128x128xf32, #tpu.memory_space<vmem>>, %arg7: memref<1x128xf32, #tpu.memory_space<vmem>>, %arg8: memref<16x128xf32, #tpu.memory_space<vmem>>) attributes {dimension_semantics = [#tpu.dimension_semantics<parallel>], iteration_bounds = array<i64: 1>, scalar_prefetch = 0 : i64, scratch_operands = 0 : i64, tpu.core_type = #tpu.core_type<tc>, window_params = [{transform_indices = @transform_0, window_bounds = array<i64: 16, 128>}, {pipeline_mode = #tpu.pipeline_mode<synchronous>, transform_indices = @transform_1, window_bounds = array<i64: 128, 128>}, {pipeline_mode = #tpu.pipeline_mode<synchronous>, transform_indices = @transform_2, window_bounds = array<i64: 1, 128>}, {pipeline_mode = #tpu.pipeline_mode<synchronous>, transform_indices = @transform_3, window_bounds = array<i64: 128, 128>}, {pipeline_mode = #tpu.pipeline_mode<synchronous>, transform_indices = @transform_4, window_bounds = array<i64: 1, 128>}, {pipeline_mode = #tpu.pipeline_mode<synchronous>, transform_indices = @transform_5, window_bounds = array<i64: 128, 128>}, {pipeline_mode = #tpu.pipeline_mode<synchronous>, transform_indices = @transform_6, window_bounds = array<i64: 1, 128>}, {transform_indices = @transform_7, window_bounds = array<i64: 16, 128>}]} {
    %c0 = arith.constant 0 : index
    %c0_0 = arith.constant 0 : index
    %0 = vector.load %arg1[%c0, %c0_0] : memref<16x128xf32, #tpu.memory_space<vmem>>, vector<16x128xf32>
    %c0_1 = arith.constant 0 : index
    %c0_2 = arith.constant 0 : index
    %1 = vector.load %arg2[%c0_1, %c0_2] : memref<128x128xf32, #tpu.memory_space<vmem>>, vector<128x128xf32>
    %c0_3 = arith.constant 0 : index
    %c0_4 = arith.constant 0 : index
    %2 = vector.load %arg3[%c0_3, %c0_4] : memref<1x128xf32, #tpu.memory_space<vmem>>, vector<1x128xf32>
    %cst = arith.constant dense<0.000000e+00> : vector<16x128xf32>
    %3 = tpu.matmul %0, %1, %cst {dimension_numbers = #tpu.dot_dimension_numbers<[1], [0], [0], [1], [0, 0, 1, 1], [], []>} : vector<16x128xf32>, vector<128x128xf32>, vector<16x128xf32> -> vector<16x128xf32>
    %4 = vector.broadcast %2 : vector<1x128xf32> to vector<16x128xf32>
    %5 = arith.addf %3, %4 : vector<16x128xf32>
    %cst_5 = arith.constant 0.000000e+00 : f32
    %6 = vector.broadcast %cst_5 : f32 to vector<16x128xf32>
    %7 = arith.maximumf %5, %6 : vector<16x128xf32>
    %c0_6 = arith.constant 0 : index
    %c0_7 = arith.constant 0 : index
    %8 = vector.load %arg4[%c0_6, %c0_7] : memref<128x128xf32, #tpu.memory_space<vmem>>, vector<128x128xf32>
    %c0_8 = arith.constant 0 : index
    %c0_9 = arith.constant 0 : index
    %9 = vector.load %arg5[%c0_8, %c0_9] : memref<1x128xf32, #tpu.memory_space<vmem>>, vector<1x128xf32>
    %cst_10 = arith.constant dense<0.000000e+00> : vector<16x128xf32>
    %10 = tpu.matmul %7, %8, %cst_10 {dimension_numbers = #tpu.dot_dimension_numbers<[1], [0], [0], [1], [0, 0, 1, 1], [], []>} : vector<16x128xf32>, vector<128x128xf32>, vector<16x128xf32> -> vector<16x128xf32>
    %11 = vector.broadcast %9 : vector<1x128xf32> to vector<16x128xf32>
    %12 = arith.addf %10, %11 : vector<16x128xf32>
    %cst_11 = arith.constant 0.000000e+00 : f32
    %13 = vector.broadcast %cst_11 : f32 to vector<16x128xf32>
    %14 = arith.maximumf %12, %13 : vector<16x128xf32>
    %c0_12 = arith.constant 0 : index
    %c0_13 = arith.constant 0 : index
    %15 = vector.load %arg6[%c0_12, %c0_13] : memref<128x128xf32, #tpu.memory_space<vmem>>, vector<128x128xf32>
    %c0_14 = arith.constant 0 : index
    %c0_15 = arith.constant 0 : index
    %16 = vector.load %arg7[%c0_14, %c0_15] : memref<1x128xf32, #tpu.memory_space<vmem>>, vector<1x128xf32>
    %cst_16 = arith.constant dense<0.000000e+00> : vector<16x128xf32>
    %17 = tpu.matmul %14, %15, %cst_16 {dimension_numbers = #tpu.dot_dimension_numbers<[1], [0], [0], [1], [0, 0, 1, 1], [], []>} : vector<16x128xf32>, vector<128x128xf32>, vector<16x128xf32> -> vector<16x128xf32>
    %18 = vector.broadcast %16 : vector<1x128xf32> to vector<16x128xf32>
    %19 = arith.addf %17, %18 : vector<16x128xf32>
    %c0_17 = arith.constant 0 : index
    %c0_18 = arith.constant 0 : index
    %20 = vector.load %arg8[%c0_17, %c0_18] : memref<16x128xf32, #tpu.memory_space<vmem>>, vector<16x128xf32>
    tpu.vector_store %arg8[%c0_17, %c0_18], %19 {strides = array<i32>} : memref<16x128xf32, #tpu.memory_space<vmem>>, vector<16x128xf32>,
    return
  }
  func.func @transform_0(%arg0: i32) -> (i32, i32) {
    %c0_i32 = arith.constant 0 : i32
    %c0_i32_0 = arith.constant 0 : i32
    return %arg0, %c0_i32 : i32, i32
  }
  func.func @transform_1(%arg0: i32) -> (i32, i32) {
    %c0_i32 = arith.constant 0 : i32
    %c0_i32_0 = arith.constant 0 : i32
    %c0_i32_1 = arith.constant 0 : i32
    return %c0_i32, %c0_i32_0 : i32, i32
  }
  func.func @transform_2(%arg0: i32) -> (i32, i32) {
    %c0_i32 = arith.constant 0 : i32
    %c0_i32_0 = arith.constant 0 : i32
    %c0_i32_1 = arith.constant 0 : i32
    return %c0_i32, %c0_i32_0 : i32, i32
  }
  func.func @transform_3(%arg0: i32) -> (i32, i32) {
    %c0_i32 = arith.constant 0 : i32
    %c0_i32_0 = arith.constant 0 : i32
    %c0_i32_1 = arith.constant 0 : i32
    return %c0_i32, %c0_i32_0 : i32, i32
  }
  func.func @transform_4(%arg0: i32) -> (i32, i32) {
    %c0_i32 = arith.constant 0 : i32
    %c0_i32_0 = arith.constant 0 : i32
    %c0_i32_1 = arith.constant 0 : i32
    return %c0_i32, %c0_i32_0 : i32, i32
  }
  func.func @transform_5(%arg0: i32) -> (i32, i32) {
    %c0_i32 = arith.constant 0 : i32
    %c0_i32_0 = arith.constant 0 : i32
    %c0_i32_1 = arith.constant 0 : i32
    return %c0_i32, %c0_i32_0 : i32, i32
  }
  func.func @transform_6(%arg0: i32) -> (i32, i32) {
    %c0_i32 = arith.constant 0 : i32
    %c0_i32_0 = arith.constant 0 : i32
    %c0_i32_1 = arith.constant 0 : i32
    return %c0_i32, %c0_i32_0 : i32, i32
  }
  func.func @transform_7(%arg0: i32) -> (i32, i32) {
    %c0_i32 = arith.constant 0 : i32
    %c0_i32_0 = arith.constant 0 : i32
    return %arg0, %c0_i32 : i32, i32
  }
}

</mosaic_0001>

<bundles_post_ra>
// kernel: tpu_custom_call.1
= control target key start
LH: loop header
LB: loop body
LE: loop exit
PB: predicated region body
PF: predicated region fallthrough
CT: control target
= control target key end

     0   :  { %6 = vsyncpa [#allocation3], 0  ;;  %s115_s0 = inlined_call_operand.hbm [shape: f32[8,128], index: 0, kind: input, shape index: {}]   ;;  %s116_s1 = inlined_call_operand.hbm [shape: f32[8,128], index: 1, kind: output, shape index: {}]  }
   0x1   :  { %7 = vsyncpa [#allocation4], 0  ;;  %s13_s8 = sshll.u32 %s115_s0, 4  ;;  %s97_s9 = smov [#allocation2]   ;;  %s14_s8 = int_to_ptr.hbm [resolvable:$true] %s13_s8 }
   0x2   :  { %s15_s10 = sshll.u32 %s97_s9, 4  ;;  %s16_s10 = int_to_ptr.vmem [resolvable:$true] %s15_s10 }
   0x3   :  { %18 = dma.hbm_to_vmem [thread:$0]  %s14_s8, 128, %s16_s10, [#allocation3]  }
   0x4   :  { %93 = dma.done.wait [#allocation3], 128  }
   0x5   :  { %94 = vsyncadd [#allocation3], 4294967168  ;;  %s98_s11 = smov [#allocation5]   ;;  %s33_s15 = sshll.u32 %s116_s1, 4  ;;  %v23_v0 = vld [vmem:[#allocation2] sm:$0xff]  ;;  %s34_s15 = int_to_ptr.hbm [resolvable:$true] %s33_s15 }
   0x6   :  { %s31_s12 = sshll.u32 %s98_s11, 4  ;;  %v24_v1 = vmul.f32 2.0, %v23_v0  ;;  %s32_s12 = int_to_ptr.vmem [resolvable:$true] %s31_s12 }
   0x8   :  { %25 = vst [vmem:[#allocation5] sm:$0xff] %v24_v1 }
   0x9   :  { %36 = dma.vmem_to_hbm [thread:$0]  %s32_s12, 128, %s34_s15, [#allocation4]  }
   0xa   :  { %95 = dma.done.wait [#allocation4], 128  }
   0xb   :  { %96 = vsyncadd [#allocation4], 4294967168 }
   0xc   :  { %41 = vsyncpa [#allocation3], 1 }
   0xd   :  { %42 = vsyncpa [#allocation4], 1 }

// kernel: tpu_custom_call.1
= control target key start
LH: loop header
LB: loop body
LE: loop exit
PB: predicated region body
PF: predicated region fallthrough
CT: control target
= control target key end

     0   :  { %12 = vsyncpa [#allocation3], 0  ;;  %s488_s0 = inlined_call_operand.hbm [shape: f32[16,128], index: 0, kind: input, shape index: {}]   ;;  %s489_s1 = inlined_call_operand.hbm [shape: f32[128,128], index: 1, kind: input, shape index: {}]   ;;  %s490_s2 = inlined_call_operand.vmem [shape: f32[1,128], index: 2, kind: input, shape index: {}]   ;;  %s491_s3 = inlined_call_operand.hbm [shape: f32[128,128], index: 3, kind: input, shape index: {}]   ;;  %s492_s4 = inlined_call_operand.vmem [shape: f32[1,128], index: 4, kind: input, shape index: {}]   ;;  %s493_s5 = inlined_call_operand.hbm [shape: f32[128,128], index: 5, kind: input, shape index: {}]   ;;  %s494_s6 = inlined_call_operand.vmem [shape: f32[1,128], index: 6, kind: input, shape index: {}]   ;;  %s495_s7 = inlined_call_operand.hbm [shape: f32[16,128], index: 7, kind: output, shape index: {}]  }
   0x1   :  { %13 = vsyncpa [#allocation6], 0 }
   0x2   :  { %14 = vsyncpa [#allocation9], 0 }
   0x3   :  { %15 = vsyncpa [#allocation4], 0  ;;  %s33_s26 = sshll.u32 %s489_s1, 4  ;;  %s402_s27 = smov [#allocation5]   ;;  %s34_s26 = int_to_ptr.hbm [resolvable:$true] %s33_s26 }
   0x4   :  { %s35_s28 = sshll.u32 %s402_s27, 4  ;;  %s20_s8 = sshll.u32 %s488_s0, 4  ;;  %s36_s28 = int_to_ptr.vmem [resolvable:$true] %s35_s28  ;;  %s21_s8 = int_to_ptr.hbm [resolvable:$true] %s20_s8 }
   0x5   :  { %s403_s9 = smov 128   ;;  %s404_s10 = smov 8  }
   0x6   :  { %41 = dma.hbm_to_vmem [thread:$0]  %s34_s26, 2048, %s36_s28, [#allocation6], %s403_s9, %s403_s9, %s404_s10  }
   0x7   :  { %s405_s11 = smov [#allocation2]   ;;  %s48_s1 = sshll.u32 %s491_s3, 4  ;;  %s49_s1 = int_to_ptr.hbm [resolvable:$true] %s48_s1 }
   0x8   :  { %s22_s12 = sshll.u32 %s405_s11, 4  ;;  %s63_s16 = sshll.u32 %s493_s5, 4  ;;  %s23_s12 = int_to_ptr.vmem [resolvable:$true] %s22_s12  ;;  %s64_s16 = int_to_ptr.hbm [resolvable:$true] %s63_s16 }
   0x9   :  { %28 = dma.hbm_to_vmem [thread:$0]  %s21_s8, 256, %s23_s12, [#allocation3], %s403_s9, %s403_s9, %s404_s10  }
   0xa   :  { %s406_s17 = smov [#allocation7]   ;;  %s407_s19 = smov [#allocation8]  }
   0xb   :  { %s50_s18 = sshll.u32 %s406_s17, 4  ;;  %s65_s3 = sshll.u32 %s407_s19, 4  ;;  %s51_s18 = int_to_ptr.vmem [resolvable:$true] %s50_s18  ;;  %s66_s3 = int_to_ptr.vmem [resolvable:$true] %s65_s3 }
   0xc   :  { %56 = dma.hbm_to_vmem [thread:$0]  %s49_s1, 2048, %s51_s18, [#allocation6], %s403_s9, %s403_s9, %s404_s10  }
   0xd   :  { %71 = dma.hbm_to_vmem [thread:$0]  %s64_s16, 2048, %s66_s3, [#allocation9], %s403_s9, %s403_s9, %s404_s10  }
   0xe   :  { %394 = dma.done.wait [#allocation3], 256  }
   0xf   :  { %395 = vsyncadd [#allocation3], 4294967040 }
  0x10   :  { %396 = dma.done.wait [#allocation6], 4096  }
  0x11   :  { %397 = vsyncadd [#allocation6], 4294963200 }
  0x12   :  { %398 = dma.done.wait [#allocation9], 2048  }
  0x13   :  { %399 = vsyncadd [#allocation9], 4294965248  ;;  %v107_v0 = vld [vmem:[#allocation5 + $0x78] sm:$0xff]  ;;  %v106_v1 = vld [vmem:[#allocation5 + $0x70] sm:$0xff]  ;;  %s408_s24 = smov [#allocation10]  }
  0x14   :  { %112 = vmatpush.msra.mxu0 %v107_v0  ;;  %248 = vmatpush.msra.mxu3 %v107_v0  ;;  %v105_v2 = vld [vmem:[#allocation5 + $0x68] sm:$0xff]  ;;  %v104_v3 = vld [vmem:[#allocation5 + $0x60] sm:$0xff]  ;;  %v103_v4 = vld [vmem:[#allocation5 + $0x58] sm:$0xff]  ;;  %s231_s25 = sshll.u32 %s408_s24, 4  ;;  %s232_s25 = int_to_ptr.vmem [resolvable:$true] %s231_s25 }
  0x15   :  { %v152_v5 = vld [vmem:[#allocation7 + $0x78] sm:$0xff]  ;;  %v151_v6 = vld [vmem:[#allocation7 + $0x70] sm:$0xff]  ;;  %v150_v8 = vld [vmem:[#allocation7 + $0x68] sm:$0xff] }
  0x16   :  { %113 = vmatpush.msra.mxu0 %v106_v1  ;;  %249 = vmatpush.msra.mxu3 %v106_v1  ;;  %v102_v7 = vld [vmem:[#allocation5 + $0x50] sm:$0xff]  ;;  %v101_v9 = vld [vmem:[#allocation5 + $0x48] sm:$0xff]  ;;  %v149_v10 = vld [vmem:[#allocation7 + $0x60] sm:$0xff] }
  0x17   :  { %157 = vmatpush.msra.mxu1 %v152_v5  ;;  %v100_v11 = vld [vmem:[#allocation5 + $0x40] sm:$0xff]  ;;  %v148_v12 = vld [vmem:[#allocation7 + $0x58] sm:$0xff]  ;;  %v147_v14 = vld [vmem:[#allocation7 + $0x50] sm:$0xff] }
  0x18   :  { %114 = vmatpush.msra.mxu0 %v105_v2  ;;  %250 = vmatpush.msra.mxu3 %v105_v2  ;;  %v99_v13 = vld [vmem:[#allocation5 + $0x38] sm:$0xff]  ;;  %v98_v15 = vld [vmem:[#allocation5 + $0x30] sm:$0xff]  ;;  %v146_v16 = vld [vmem:[#allocation7 + $0x48] sm:$0xff] }
  0x19   :  { %158 = vmatpush.msra.mxu1 %v151_v6  ;;  %v97_v17 = vld [vmem:[#allocation5 + $0x28] sm:$0xff]  ;;  %v145_v18 = vld [vmem:[#allocation7 + $0x40] sm:$0xff]  ;;  %v144_v20 = vld [vmem:[#allocation7 + $0x38] sm:$0xff] }
  0x1a   :  { %115 = vmatpush.msra.mxu0 %v104_v3  ;;  %251 = vmatpush.msra.mxu3 %v104_v3  ;;  %v96_v19 = vld [vmem:[#allocation5 + $0x20] sm:$0xff]  ;;  %v95_v21 = vld [vmem:[#allocation5 + $0x18] sm:$0xff]  ;;  %v143_v22 = vld [vmem:[#allocation7 + $0x30] sm:$0xff] }
  0x1b   :  { %159 = vmatpush.msra.mxu1 %v150_v8  ;;  %v94_v23 = vld [vmem:[#allocation5 + $0x10] sm:$0xff]  ;;  %v142_v24 = vld [vmem:[#allocation7 + $0x28] sm:$0xff]  ;;  %v141_v26 = vld [vmem:[#allocation7 + $0x20] sm:$0xff] }
  0x1c   :  { %116 = vmatpush.msra.mxu0 %v103_v4  ;;  %252 = vmatpush.msra.mxu3 %v103_v4  ;;  %v93_v25 = vld [vmem:[#allocation5 + $0x8] sm:$0xff]  ;;  %v92_v27 = vld [vmem:[#allocation5] sm:$0xff]  ;;  %v90_v28 = vld [vmem:[#allocation2] sm:$0xff] }
  0x1d   :  { %160 = vmatpush.msra.mxu1 %v149_v10  ;;  %v91_v29 = vld [vmem:[#allocation2 + $0x8] sm:$0xff]  ;;  %v139_v31 = vld [vmem:[#allocation7 + $0x10] sm:$0xff]  ;;  %v138_v32 = vld [vmem:[#allocation7 + $0x8] sm:$0xff] }
  0x1e   :  { %117 = vmatpush.msra.mxu0 %v102_v7  ;;  %253 = vmatpush.msra.mxu3 %v102_v7  ;;  %v140_v30 = vld [vmem:[#allocation7 + $0x18] sm:$0xff]  ;;  %v137_v33 = vld [vmem:[#allocation7] sm:$0xff]  ;;  %v196_v35 = vld [vmem:[#allocation8 + $0x70] sm:$0xff] }
  0x1f   :  { %161 = vmatpush.msra.mxu1 %v148_v12  ;;  %v197_v34 = vld [vmem:[#allocation8 + $0x78] sm:$0xff]  ;;  %v195_v36 = vld [vmem:[#allocation8 + $0x68] sm:$0xff]  ;;  %v194_v37 = vld [vmem:[#allocation8 + $0x60] sm:$0xff] }
  0x20   :  { %118 = vmatpush.msra.mxu0 %v101_v9  ;;  %254 = vmatpush.msra.mxu3 %v101_v9  ;;  %v193_v38 = vld [vmem:[#allocation8 + $0x58] sm:$0xff]  ;;  %v192_v39 = vld [vmem:[#allocation8 + $0x50] sm:$0xff]  ;;  %v191_v40 = vld [vmem:[#allocation8 + $0x48] sm:$0xff] }
  0x21   :  { %162 = vmatpush.msra.mxu1 %v147_v14  ;;  %202 = vmatpush.msra.mxu2 %v197_v34  ;;  %v190_v41 = vld [vmem:[#allocation8 + $0x40] sm:$0xff]  ;;  %v189_v42 = vld [vmem:[#allocation8 + $0x38] sm:$0xff]  ;;  %v271_v43 = vld [vmem:[%s490_s2] ss:$0 sm:$0xff] }
  0x22   :  { %119 = vmatpush.msra.mxu0 %v100_v11  ;;  %255 = vmatpush.msra.mxu3 %v100_v11  ;;  %v188_v44 = vld [vmem:[#allocation8 + $0x30] sm:$0xff]  ;;  %v187_v45 = vld [vmem:[#allocation8 + $0x28] sm:$0xff]  ;;  %v186_v48 = vld [vmem:[#allocation8 + $0x20] sm:$0xff] }
  0x23   :  { %163 = vmatpush.msra.mxu1 %v146_v16  ;;  %203 = vmatpush.msra.mxu2 %v196_v35  ;;  %v185_v50 = vld [vmem:[#allocation8 + $0x18] sm:$0xff]  ;;  %v184_v54 = vld [vmem:[#allocation8 + $0x10] sm:$0xff]  ;;  %v183_v55 = vld [vmem:[#allocation8 + $0x8] sm:$0xff] }
  0x24   :  { %120 = vmatpush.msra.mxu0 %v99_v13  ;;  %256 = vmatpush.msra.mxu3 %v99_v13  ;;  %v182_v56 = vld [vmem:[#allocation8] sm:$0xff]  ;;  %v272_v57 = vld [vmem:[%s492_s4] ss:$0 sm:$0xff]  ;;  %s233_s4 = sshll.u32 %s495_s7, 4  ;;  %s234_s4 = int_to_ptr.hbm [resolvable:$true] %s233_s4 }
  0x25   :  { %164 = vmatpush.msra.mxu1 %v145_v18  ;;  %204 = vmatpush.msra.mxu2 %v195_v36  ;;  %v273_v0 = vld [vmem:[%s494_s6] ss:$0 sm:$0xff] }
  0x26   :  { %121 = vmatpush.msra.mxu0 %v98_v15  ;;  %257 = vmatpush.msra.mxu3 %v98_v15 }
  0x27   :  { %165 = vmatpush.msra.mxu1 %v144_v20  ;;  %205 = vmatpush.msra.mxu2 %v194_v37 }
  0x28   :  { %122 = vmatpush.msra.mxu0 %v97_v17  ;;  %258 = vmatpush.msra.mxu3 %v97_v17 }
  0x29   :  { %166 = vmatpush.msra.mxu1 %v143_v22  ;;  %206 = vmatpush.msra.mxu2 %v193_v38 }
  0x2a   :  { %123 = vmatpush.msra.mxu0 %v96_v19  ;;  %259 = vmatpush.msra.mxu3 %v96_v19 }
  0x2b   :  { %167 = vmatpush.msra.mxu1 %v142_v24  ;;  %207 = vmatpush.msra.mxu2 %v192_v39 }
  0x2c   :  { %124 = vmatpush.msra.mxu0 %v95_v21  ;;  %260 = vmatpush.msra.mxu3 %v95_v21 }
  0x2d   :  { %168 = vmatpush.msra.mxu1 %v141_v26  ;;  %208 = vmatpush.msra.mxu2 %v191_v40 }
  0x2e   :  { %125 = vmatpush.msra.mxu0 %v94_v23  ;;  %261 = vmatpush.msra.mxu3 %v94_v23 }
  0x2f   :  { %169 = vmatpush.msra.mxu1 %v140_v30  ;;  %209 = vmatpush.msra.mxu2 %v190_v41 }
  0x30   :  { %126 = vmatpush.msra.mxu0 %v93_v25  ;;  %262 = vmatpush.msra.mxu3 %v93_v25 }
  0x31   :  { %170 = vmatpush.msra.mxu1 %v139_v31  ;;  %210 = vmatpush.msra.mxu2 %v189_v42 }
  0x32   :  { %127 = vmatpush.msra.mxu0 %v92_v27  ;;  %263 = vmatpush.msra.mxu3 %v92_v27 }
  0x33   :  { %128 = vmatmul.f32.vlgmr.msra.gmra.mxu0 %v90_v28  ;;  %131 = vmatmul.f32.vlgmr.msra.gmra.mxu3 %v91_v29 }
  0x34   :  { %171 = vmatpush.msra.mxu1 %v138_v32  ;;  %211 = vmatpush.msra.mxu2 %v188_v44 }
  0x36   :  { %172 = vmatpush.msra.mxu1 %v137_v33  ;;  %212 = vmatpush.msra.mxu2 %v187_v45 }
  0x38   :  { %213 = vmatpush.msra.mxu2 %v186_v48 }
  0x3a   :  { %214 = vmatpush.msra.mxu2 %v185_v50 }
  0x3c   :  { %215 = vmatpush.msra.mxu2 %v184_v54 }
  0x3e   :  { %216 = vmatpush.msra.mxu2 %v183_v55 }
  0x40   :  { %217 = vmatpush.msra.mxu2 %v182_v56 }
  0xb0   :  { %v129_v46 = vpop.f32.mrf.mxu0 }
  0xb1   :  { %v130_v47 = vadd.f32 %v271_v43, %v129_v46 }
  0xb3   :  { %v135_v49 = vmax.f32 %v130_v47, 0.0 }
  0xb5   :  { %173 = vmatmul.f32.vlgmr.msra.gmra.mxu1 %v135_v49 }
  0xb6   :  { %v132_v51 = vpop.f32.mrf.mxu3 }
  0xb7   :  { %v133_v52 = vadd.f32 %v271_v43, %v132_v51 }
  0xb9   :  { %v136_v53 = vmax.f32 %v133_v52, 0.0 }
  0xbd   :  { %176 = vmatmul.f32.gmra.mxu1 %v136_v53 }
 0x132   :  { %v174_v58 = vpop.f32.mrf.mxu1 }
 0x133   :  { %v175_v59 = vadd.f32 %v272_v57, %v174_v58 }
 0x135   :  { %v180_v60 = vmax.f32 %v175_v59, 0.0 }
 0x137   :  { %218 = vmatmul.f32.vlgmr.msra.gmra.mxu2 %v180_v60 }
 0x13a   :  { %v177_v61 = vpop.f32.mrf.mxu1 }
 0x13b   :  { %v178_v62 = vadd.f32 %v272_v57, %v177_v61 }
 0x13d   :  { %v181_v63 = vmax.f32 %v178_v62, 0.0 }
 0x13f   :  { %221 = vmatmul.f32.gmra.mxu2 %v181_v63 }
 0x1ba   :  { %v219_v1 = vpop.f32.mrf.mxu2 }
 0x1bb   :  { %v220_v2 = vadd.f32 %v273_v0, %v219_v1 }
 0x1bd   :  { %225 = vst [vmem:[#allocation10] sm:$0xff] %v220_v2 }
 0x1c2   :  { %v222_v3 = vpop.f32.mrf.mxu2 }
 0x1c3   :  { %v223_v4 = vadd.f32 %v273_v0, %v222_v3 }
 0x1c5   :  { %226 = vst [vmem:[#allocation10 + $0x8] sm:$0xff] %v223_v4 }
 0x1c6   :  { %239 = dma.vmem_to_hbm [thread:$0]  %s232_s25, 256, %s234_s4, [#allocation4], %s403_s9, %s403_s9, %s404_s10  }
 0x1c7   :  { %400 = dma.done.wait [#allocation4], 256  }
 0x1c8   :  { %401 = vsyncadd [#allocation4], 4294967040 }
 0x1c9   :  { %244 = vsyncpa [#allocation3], 1 }
 0x1ca   :  { %245 = vsyncpa [#allocation6], 1 }
 0x1cb   :  { %246 = vsyncpa [#allocation9], 1 }
 0x1cc   :  { %247 = vsyncpa [#allocation4], 1 }

</bundles_post_ra>
